<compile_context>
chip_gen: v7x
topology: tpu7x:2x2x1
jax: 0.10.0
libtpu: 0.0.40
codegen_flags: <defaults>
</compile_context>

<pallas_src>
import jax
import jax.numpy as jnp
from jax.experimental import pallas as pl
from jax.experimental.pallas import tpu as pltpu


def _round_up(x, m):
    return ((x + m - 1) // m) * m


def _pick_tile(p, max_tile):
    """Largest multiple of 128 that divides p and is <= max_tile."""
    best = 128
    cap = min(p, max_tile)
    for cand in range(128, cap + 1, 128):
        if p % cand == 0:
            best = cand
    return best


# ---------------- single-step kernel: whole problem resident in VMEM --------
def _mvt_single_kernel(a1_ref, a2_ref, y1_ref, y2_ref, x1_ref, x2_ref):
    # x1 = A1 @ y1 : (P, P) @ (P, 1) -> (P, 1)
    x1_ref[...] = jnp.dot(a1_ref[...], y1_ref[...],
                          preferred_element_type=jnp.float32).astype(x1_ref.dtype)
    # x2 = A2^T @ y2, lane-dense as y2_row @ A2 : (1, P) @ (P, P) -> (1, P)
    x2_ref[...] = jnp.dot(y2_ref[...], a2_ref[...],
                          preferred_element_type=jnp.float32).astype(x2_ref.dtype)


# ---------------- tiled kernel: grid = (output tiles i, reduction tiles k) --
def _mvt_tiled_kernel(a1_ref, a2_ref, y1_ref, y2_ref, x1_ref, x2_ref,
                      acc1_ref, acc2_ref):
    k = pl.program_id(1)

    @pl.when(k == 0)
    def _():
        acc1_ref[...] = jnp.zeros_like(acc1_ref)
        acc2_ref[...] = jnp.zeros_like(acc2_ref)

    # y vectors are fully VMEM-resident; grab the k-th reduction chunk.
    y1_chunk = y1_ref[k]          # (tk, 1)
    y2_chunk = y2_ref[k]          # (1, tk)

    # x1 tile: (tm, tk) @ (tk, 1) -> (tm, 1)
    acc1_ref[...] += jnp.dot(a1_ref[...], y1_chunk,
                             preferred_element_type=jnp.float32)
    # x2 tile: (1, tk) @ (tk, tm) -> (1, tm)   (lane-dense (A2^T y2)^T chunk)
    acc2_ref[...] += jnp.dot(y2_chunk, a2_ref[...],
                             preferred_element_type=jnp.float32)

    @pl.when(k == pl.num_programs(1) - 1)
    def _():
        x1_ref[...] = acc1_ref[...].astype(x1_ref.dtype)
        x2_ref[...] = acc2_ref[...].astype(x2_ref.dtype)


def mvt(A1, A2, y1, y2, *, max_tile=1024, vmem_limit_bytes=48 << 20):
    N = A1.shape[0]
    assert A1.shape == (N, N) and A2.shape == (N, N), "Polybench mvt is square"
    assert y1.shape == (N,) and y2.shape == (N,)
    dtype = A1.dtype

    # Pad to a lane/sublane-friendly size; zero padding contributes zeros.
    P = _round_up(N, 128)
    t = _pick_tile(P, max_tile)

    if P != N:
        pad = P - N
        A1p = jnp.pad(A1, ((0, pad), (0, pad)))
        A2p = jnp.pad(A2, ((0, pad), (0, pad)))
        y1p = jnp.pad(y1, (0, pad))
        y2p = jnp.pad(y2, (0, pad))
    else:
        A1p, A2p, y1p, y2p = A1, A2, y1, y2

    if t == P:
        # ---- whole problem fits one tile: single grid step, no accumulators.
        x1_col, x2_row = pl.pallas_call(
            _mvt_single_kernel,
            out_shape=(jax.ShapeDtypeStruct((P, 1), dtype),
                       jax.ShapeDtypeStruct((1, P), dtype)),
            grid=(1,),
            in_specs=[
                pl.BlockSpec((P, P), lambda i: (0, 0)),   # A1 (whole)
                pl.BlockSpec((P, P), lambda i: (0, 0)),   # A2 (whole)
                pl.BlockSpec((P, 1), lambda i: (0, 0)),   # y1 column
                pl.BlockSpec((1, P), lambda i: (0, 0)),   # y2 row
            ],
            out_specs=[
                pl.BlockSpec((P, 1), lambda i: (0, 0)),   # x1 column
                pl.BlockSpec((1, P), lambda i: (0, 0)),   # x2 row
            ],
            compiler_params=pltpu.CompilerParams(
                dimension_semantics=("arbitrary",),
                vmem_limit_bytes=vmem_limit_bytes),
        )(A1p, A2p, y1p.reshape(P, 1), y2p.reshape(1, P))
    else:
        nk = P // t
        # Pre-chunk y vectors along a leading axis so the kernel indexes the
        # k-th chunk with a cheap leading-axis dynamic index.
        y1_res = y1p.reshape(nk, t, 1)
        y2_res = y2p.reshape(nk, 1, t)

        x1_col, x2_row = pl.pallas_call(
            _mvt_tiled_kernel,
            out_shape=(jax.ShapeDtypeStruct((P, 1), dtype),
                       jax.ShapeDtypeStruct((1, P), dtype)),
            grid_spec=pltpu.PrefetchScalarGridSpec(
                num_scalar_prefetch=0,
                grid=(P // t, nk),
                in_specs=[
                    pl.BlockSpec((t, t), lambda i, k: (i, k)),          # A1 tile
                    pl.BlockSpec((t, t), lambda i, k: (k, i)),          # A2 tile
                    pl.BlockSpec((nk, t, 1), lambda i, k: (0, 0, 0)),   # y1 resident
                    pl.BlockSpec((nk, 1, t), lambda i, k: (0, 0, 0)),   # y2 resident
                ],
                out_specs=[
                    pl.BlockSpec((t, 1), lambda i, k: (i, 0)),          # x1 tile
                    pl.BlockSpec((1, t), lambda i, k: (0, i)),          # x2 tile
                ],
                scratch_shapes=[
                    pltpu.VMEM((t, 1), jnp.float32),
                    pltpu.VMEM((1, t), jnp.float32),
                ],
            ),
            compiler_params=pltpu.CompilerParams(
                dimension_semantics=("parallel", "arbitrary"),
                vmem_limit_bytes=vmem_limit_bytes),
        )(A1p, A2p, y1_res, y2_res)

    x1 = x1_col.reshape(P)[:N]
    x2 = x2_row.reshape(P)[:N]
    return x1, x2


if __name__ == "__main__":
    key = jax.random.PRNGKey(0)
    k1, k2, k3, k4 = jax.random.split(key, 4)

    # Case 1: small square problem -> single-step path (whole problem in VMEM).
    N = 256
    A1 = jax.random.normal(k1, (N, N), dtype=jnp.float32)
    A2 = jax.random.normal(k2, (N, N), dtype=jnp.float32)
    y1 = jax.random.normal(k3, (N,), dtype=jnp.float32)
    y2 = jax.random.normal(k4, (N,), dtype=jnp.float32)

    x1, x2 = jax.block_until_ready(mvt(A1, A2, y1, y2))
    x1_ref = jnp.dot(A1, y1, precision=jax.lax.Precision.HIGHEST)
    x2_ref = jnp.dot(A2.T, y2, precision=jax.lax.Precision.HIGHEST)
    assert jnp.allclose(x1, x1_ref, atol=1e-3, rtol=1e-3)
    assert jnp.allclose(x2, x2_ref, atol=1e-3, rtol=1e-3)

    # Case 2: non-tile-aligned size with a forced small tile -> exercises the
    # padded, tiled, resident-y accumulation path.
    M = 300
    B1 = jax.random.normal(k1, (M, M), dtype=jnp.float32)
    B2 = jax.random.normal(k2, (M, M), dtype=jnp.float32)
    z1 = jax.random.normal(k3, (M,), dtype=jnp.float32)
    z2 = jax.random.normal(k4, (M,), dtype=jnp.float32)

    w1, w2 = jax.block_until_ready(mvt(B1, B2, z1, z2, max_tile=128))
    w1_ref = jnp.dot(B1, z1, precision=jax.lax.Precision.HIGHEST)
    w2_ref = jnp.dot(B2.T, z2, precision=jax.lax.Precision.HIGHEST)
    assert jnp.allclose(w1, w1_ref, atol=1e-3, rtol=1e-3)
    assert jnp.allclose(w2, w2_ref, atol=1e-3, rtol=1e-3)

    print("KERNEL_OK")
</pallas_src>

<mosaic_0001>
module attributes {stable_mosaic.version = 11 : i64} {
  func.func @_mvt_single_kernel(%arg0: i32, %arg1: memref<256x256xf32, #tpu.memory_space<vmem>>, %arg2: memref<256x256xf32, #tpu.memory_space<vmem>>, %arg3: memref<256x1xf32, #tpu.memory_space<vmem>>, %arg4: memref<1x256xf32, #tpu.memory_space<vmem>>, %arg5: memref<256x1xf32, #tpu.memory_space<vmem>>, %arg6: memref<1x256xf32, #tpu.memory_space<vmem>>) attributes {dimension_semantics = [#tpu.dimension_semantics<arbitrary>], iteration_bounds = array<i64: 1>, scalar_prefetch = 0 : i64, scratch_operands = 0 : i64, tpu.core_type = #tpu.core_type<tc>, window_params = [{pipeline_mode = #tpu.pipeline_mode<synchronous>, transform_indices = @transform_0, window_bounds = array<i64: 256, 256>}, {pipeline_mode = #tpu.pipeline_mode<synchronous>, transform_indices = @transform_1, window_bounds = array<i64: 256, 256>}, {pipeline_mode = #tpu.pipeline_mode<synchronous>, transform_indices = @transform_2, window_bounds = array<i64: 256, 1>}, {pipeline_mode = #tpu.pipeline_mode<synchronous>, transform_indices = @transform_3, window_bounds = array<i64: 1, 256>}, {pipeline_mode = #tpu.pipeline_mode<synchronous>, transform_indices = @transform_4, window_bounds = array<i64: 256, 1>}, {pipeline_mode = #tpu.pipeline_mode<synchronous>, transform_indices = @transform_5, window_bounds = array<i64: 1, 256>}]} {
    %c0 = arith.constant 0 : index
    %c0_0 = arith.constant 0 : index
    %0 = vector.load %arg1[%c0, %c0_0] : memref<256x256xf32, #tpu.memory_space<vmem>>, vector<256x256xf32>
    %c0_1 = arith.constant 0 : index
    %c0_2 = arith.constant 0 : index
    %1 = vector.load %arg3[%c0_1, %c0_2] : memref<256x1xf32, #tpu.memory_space<vmem>>, vector<256x1xf32>
    %cst = arith.constant dense<0.000000e+00> : vector<256x1xf32>
    %2 = tpu.matmul %0, %1, %cst {dimension_numbers = #tpu.dot_dimension_numbers<[1], [0], [0], [1], [0, 0, 1, 1], [], []>} : vector<256x256xf32>, vector<256x1xf32>, vector<256x1xf32> -> vector<256x1xf32>
    %c0_3 = arith.constant 0 : index
    %c0_4 = arith.constant 0 : index
    %3 = vector.load %arg5[%c0_3, %c0_4] : memref<256x1xf32, #tpu.memory_space<vmem>>, vector<256x1xf32>
    tpu.vector_store %arg5[%c0_3, %c0_4], %2 {strides = array<i32>} : memref<256x1xf32, #tpu.memory_space<vmem>>, vector<256x1xf32>,
    %c0_5 = arith.constant 0 : index
    %c0_6 = arith.constant 0 : index
    %4 = vector.load %arg4[%c0_5, %c0_6] : memref<1x256xf32, #tpu.memory_space<vmem>>, vector<1x256xf32>
    %c0_7 = arith.constant 0 : index
    %c0_8 = arith.constant 0 : index
    %5 = vector.load %arg2[%c0_7, %c0_8] : memref<256x256xf32, #tpu.memory_space<vmem>>, vector<256x256xf32>
    %cst_9 = arith.constant dense<0.000000e+00> : vector<1x256xf32>
    %6 = tpu.matmul %4, %5, %cst_9 {dimension_numbers = #tpu.dot_dimension_numbers<[1], [0], [0], [1], [0, 0, 1, 1], [], []>} : vector<1x256xf32>, vector<256x256xf32>, vector<1x256xf32> -> vector<1x256xf32>
    %c0_10 = arith.constant 0 : index
    %c0_11 = arith.constant 0 : index
    %7 = vector.load %arg6[%c0_10, %c0_11] : memref<1x256xf32, #tpu.memory_space<vmem>>, vector<1x256xf32>
    tpu.vector_store %arg6[%c0_10, %c0_11], %6 {strides = array<i32>} : memref<1x256xf32, #tpu.memory_space<vmem>>, vector<1x256xf32>,
    return
  }
  func.func @transform_0(%arg0: i32) -> (i32, i32) {
    %c0_i32 = arith.constant 0 : i32
    %c0_i32_0 = arith.constant 0 : i32
    %c0_i32_1 = arith.constant 0 : i32
    return %c0_i32, %c0_i32_0 : i32, i32
  }
  func.func @transform_1(%arg0: i32) -> (i32, i32) {
    %c0_i32 = arith.constant 0 : i32
    %c0_i32_0 = arith.constant 0 : i32
    %c0_i32_1 = arith.constant 0 : i32
    return %c0_i32, %c0_i32_0 : i32, i32
  }
  func.func @transform_2(%arg0: i32) -> (i32, i32) {
    %c0_i32 = arith.constant 0 : i32
    %c0_i32_0 = arith.constant 0 : i32
    %c0_i32_1 = arith.constant 0 : i32
    return %c0_i32, %c0_i32_0 : i32, i32
  }
  func.func @transform_3(%arg0: i32) -> (i32, i32) {
    %c0_i32 = arith.constant 0 : i32
    %c0_i32_0 = arith.constant 0 : i32
    %c0_i32_1 = arith.constant 0 : i32
    return %c0_i32, %c0_i32_0 : i32, i32
  }
  func.func @transform_4(%arg0: i32) -> (i32, i32) {
    %c0_i32 = arith.constant 0 : i32
    %c0_i32_0 = arith.constant 0 : i32
    %c0_i32_1 = arith.constant 0 : i32
    return %c0_i32, %c0_i32_0 : i32, i32
  }
  func.func @transform_5(%arg0: i32) -> (i32, i32) {
    %c0_i32 = arith.constant 0 : i32
    %c0_i32_0 = arith.constant 0 : i32
    %c0_i32_1 = arith.constant 0 : i32
    return %c0_i32, %c0_i32_0 : i32, i32
  }
}

</mosaic_0001>

<bundles_post_ra>
// kernel: tpu_custom_call.1
= control target key start
LH: loop header
LB: loop body
LE: loop exit
PB: predicated region body
PF: predicated region fallthrough
CT: control target
= control target key end

     0   :  { %11 = vsyncpa [#allocation3], 0  ;;  %s1110_s0 = inlined_call_operand.hbm [shape: f32[256,256], index: 0, kind: input, shape index: {}]   ;;  %s1111_s1 = inlined_call_operand.hbm [shape: f32[256,256], index: 1, kind: input, shape index: {}]   ;;  %s1112_s2 = inlined_call_operand.vmem [shape: f32[256,1], index: 2, kind: input, shape index: {}]   ;;  %s1113_s3 = inlined_call_operand.vmem [shape: f32[1,256], index: 3, kind: input, shape index: {}]   ;;  %s1114_s4 = inlined_call_operand.vmem [shape: f32[256,1], index: 4, kind: output, shape index: {0}]   ;;  %s1115_s5 = inlined_call_operand.hbm [shape: f32[1,256], index: 5, kind: output, shape index: {1}]  }
   0x1   :  { %12 = vsyncpa [#allocation6], 0 }
   0x2   :  { %13 = vsyncpa [#allocation4], 0  ;;  %s783_s18 = smov [#allocation2]   ;;  %s711_s22 = scalar_lea.hbm %s1110_s0, 8192 }
   0x3   :  { %s19_s19 = sshll.u32 %s783_s18, 4  ;;  %p712_p0 = scmp.ne.s32.totalorder %s1110_s0, %s711_s22  ;;  %s20_s19 = int_to_ptr.vmem [resolvable:$true] %s19_s19 }
   0x4   :  { %p715_p1 = scmp.lt.u32.totalorder %s711_s22, %s1110_s0 }
   0x6   :  { %p717_p2 = pnand %p715_p1, %p712_p0 }
   0x8   :  { %720 = shalt.err (!%p717_p2)
}
   0x9   :  { %s721_s27 = scalar_lea.vmem %s20_s19, 8192  ;;  %p726_p4 = scmp.lt.s32.totalorder %s20_s19, %s20_s19 }
   0xa   :  { %p722_p3 = scmp.ne.s32.totalorder %s20_s19, %s721_s27  ;;  %p727_p5 = scmp.lt.s32.totalorder %s721_s27, %s721_s27 }
   0xc   :  { %p728_p6 = por %p727_p5, %p726_p4 }
   0xe   :  { %p729_p7 = pnand %p728_p6, %p722_p3 }
  0x10   :  { %732 = shalt.err (!%p729_p7)
}
  0x11   :  { %s784_s28 = smov 256   ;;  %s785_s29 = smov 16  }
  0x12   :  { %25 = dma.hbm_to_vmem [thread:$0]  %s1110_s0, 8192, %s20_s19, [#allocation3], %s784_s28, %s784_s28, %s785_s29  }
  0x13   :  { %s786_s7 = smov [#allocation5]   ;;  %s733_s11 = scalar_lea.hbm %s1111_s1, 8192 }
  0x14   :  { %s31_s8 = sshll.u32 %s786_s7, 4  ;;  %p734_p8 = scmp.ne.s32.totalorder %s1111_s1, %s733_s11  ;;  %s32_s8 = int_to_ptr.vmem [resolvable:$true] %s31_s8 }
  0x15   :  { %p737_p9 = scmp.lt.u32.totalorder %s733_s11, %s1111_s1 }
  0x17   :  { %p739_p10 = pnand %p737_p9, %p734_p8 }
  0x19   :  { %742 = shalt.err (!%p739_p10)
}
  0x1a   :  { %s743_s16 = scalar_lea.vmem %s32_s8, 8192  ;;  %p748_p12 = scmp.lt.s32.totalorder %s32_s8, %s32_s8 }
  0x1b   :  { %p744_p11 = scmp.ne.s32.totalorder %s32_s8, %s743_s16  ;;  %p749_p13 = scmp.lt.s32.totalorder %s743_s16, %s743_s16 }
  0x1d   :  { %p750_p0 = por %p749_p13, %p748_p12 }
  0x1f   :  { %p751_p1 = pnand %p750_p0, %p744_p11 }
  0x21   :  { %754 = shalt.err (!%p751_p1)
}
  0x22   :  { %37 = dma.hbm_to_vmem [thread:$0]  %s1111_s1, 8192, %s32_s8, [#allocation6], %s784_s28, %s784_s28, %s785_s29  }
  0x23   :  { %777 = dma.done.wait [#allocation3], 8192  }
  0x24   :  { %778 = vsyncadd [#allocation3], 4294959104 }
  0x25   :  { %779 = dma.done.wait [#allocation6], 8192  }
  0x26   :  { %780 = vsyncadd [#allocation6], 4294959104  ;;  %v787_v0 = vmov 0.0|0.0   ;;  %v112_v1 = vld [vmem:[%s1112_s2] sm:$0xff]  ;;  %v113_v2 = vld [vmem:[%s1112_s2 + $0x8] sm:$0xff]  ;;  %vm369_vm0 = vcmask 7168  }
  0x27   :  { %592 = vmatprep.subr.bf16.mxu0 %v787_v0  ;;  %v114_v3 = vld [vmem:[%s1112_s2 + $0x10] sm:$0xff]  ;;  %v593_v4 = vpack.c.bf16 %v113_v2, %v112_v1  ;;  %v115_v5 = vld [vmem:[%s1112_s2 + $0x18] sm:$0xff]  ;;  %v116_v7 = vld [vmem:[%s1112_s2 + $0x20] sm:$0xff]  ;;  %s789_s14 = smov [#allocation7]  }
  0x28   :  { %v596_v6 = vpack.c.bf16 %v115_v5, %v114_v3  ;;  %v117_v8 = vld [vmem:[%s1112_s2 + $0x28] sm:$0xff]  ;;  %v118_v10 = vld [vmem:[%s1112_s2 + $0x30] sm:$0xff]  ;;  %v119_v11 = vld [vmem:[%s1112_s2 + $0x38] sm:$0xff]  ;;  %s580_s15 = sshll.u32 %s789_s14, 4  ;;  %s581_s15 = int_to_ptr.vmem [resolvable:$true] %s580_s15 }
  0x29   :  { %594 = vmatpush1.bf16.msra.mxu0 %v593_v4  ;;  %v599_v9 = vpack.c.bf16 %v117_v8, %v116_v7  ;;  %v49_v12 = vld [vmem:[#allocation2 + $0x8] sm:$0xff]  ;;  %v602_v13 = vpack.c.bf16 %v119_v11, %v118_v10  ;;  %v120_v14 = vld [vmem:[%s1112_s2 + $0x40] sm:$0xff]  ;;  %v122_v17 = vld [vmem:[%s1112_s2 + $0x50] sm:$0xff]  ;;  %s755_s19 = scalar_lea.vmem %s581_s15, 32  ;;  %p760_p3 = scmp.lt.s32.totalorder %s581_s15, %s581_s15 }
  0x2a   :  { %595 = vmatprep.subr.bf16.mxu0 %v787_v0  ;;  %208 = vmatprep.mubr.f32.mxu0 %v49_v12  ;;  %v121_v15 = vld [vmem:[%s1112_s2 + $0x48] sm:$0xff]  ;;  %v123_v18 = vld [vmem:[%s1112_s2 + $0x58] sm:$0xff]  ;;  %v124_v20 = vld [vmem:[%s1112_s2 + $0x60] sm:$0xff]  ;;  %p756_p2 = scmp.ne.s32.totalorder %s581_s15, %s755_s19  ;;  %p761_p4 = scmp.lt.s32.totalorder %s755_s19, %s755_s19 }
  0x2b   :  { %v605_v16 = vpack.c.bf16 %v121_v15, %v120_v14  ;;  %v608_v19 = vpack.c.bf16 %v123_v18, %v122_v17  ;;  %v404_v21 = vld [vmem:[#allocation5 + $0x8] sm:$0xff]  ;;  %v406_v23 = vld [vmem:[#allocation5 + $0x18] sm:$0xff]  ;;  %v403_v24 = vld [vmem:[#allocation5] sm:$0xff] }
  0x2c   :  { %v125_v22 = vld [vmem:[%s1112_s2 + $0x68] sm:$0xff]  ;;  %v640_v25 = vpack.c.bf16 %v406_v23, %v404_v21  ;;  %v405_v26 = vld [vmem:[#allocation5 + $0x10] sm:$0xff]  ;;  %v410_v29 = vld [vmem:[#allocation5 + $0x38] sm:$0xff]  ;;  %v468_v21 = vlaneseq  ;;  %p762_p5 = por %p761_p4, %p760_p3 }
  0x2d   :  { %597 = vmatpush1.bf16.msra.mxu0 %v596_v6  ;;  %v408_v27 = vld [vmem:[#allocation5 + $0x28] sm:$0xff]  ;;  %v642_v28 = vpack.c.bf16 %v405_v26, %v403_v24  ;;  %v407_v30 = vld [vmem:[#allocation5 + $0x20] sm:$0xff]  ;;  %v611_v31 = vpack.c.bf16 %v125_v22, %v124_v20  ;;  %v409_v33 = vld [vmem:[#allocation5 + $0x30] sm:$0xff] }
  0x2e   :  { %598 = vmatprep.subr.bf16.mxu0 %v787_v0  ;;  %641 = vmatprep.subr.bf16.mxu1 %v640_v25  ;;  %v644_v32 = vpack.c.bf16 %v410_v29, %v408_v27  ;;  %v412_v34 = vld [vmem:[#allocation5 + $0x48] sm:$0xff]  ;;  %v126_v35 = vld [vmem:[%s1112_s2 + $0x70] sm:$0xff]  ;;  %v127_v36 = vld [vmem:[%s1112_s2 + $0x78] sm:$0xff]  ;;  %v646_v37 = vpack.c.bf16 %v409_v33, %v407_v30  ;;  %v935_v27 = vshrl.u32 %v468_v21, 7  ;;  %vm569_vm1 = vcmp.lt.s32.totalorder %v468_v21, 256  ;;  %p763_p6 = pnand %p762_p5, %p756_p2 }
  0x2f   :  { %643 = vmatpush1.bf16.msra.mxu1 %v642_v28  ;;  %v414_v38 = vld [vmem:[#allocation5 + $0x58] sm:$0xff]  ;;  %v411_v40 = vld [vmem:[#allocation5 + $0x40] sm:$0xff]  ;;  %v413_v41 = vld [vmem:[#allocation5 + $0x50] sm:$0xff]  ;;  %v614_v44 = vpack.c.bf16 %v127_v36, %v126_v35 }
  0x30   :  { %645 = vmatprep.subr.bf16.mxu1 %v644_v32  ;;  %v648_v39 = vpack.c.bf16 %v414_v38, %v412_v34  ;;  %v416_v42 = vld [vmem:[#allocation5 + $0x68] sm:$0xff]  ;;  %v418_v43 = vld [vmem:[#allocation5 + $0x78] sm:$0xff]  ;;  %v128_v45 = vld [vmem:[%s1112_s2 + $0x80] sm:$0xff]  ;;  %v650_v47 = vpack.c.bf16 %v413_v41, %v411_v40  ;;  %v474_v32 = vsub.s32 1, %v935_v27 }
  0x31   :  { %600 = vmatpush1.bf16.msra.mxu0 %v599_v9  ;;  %v129_v46 = vld [vmem:[%s1112_s2 + $0x88] sm:$0xff]  ;;  %v652_v48 = vpack.c.bf16 %v418_v43, %v416_v42  ;;  %v415_v49 = vld [vmem:[#allocation5 + $0x60] sm:$0xff]  ;;  %v417_v50 = vld [vmem:[#allocation5 + $0x70] sm:$0xff] }
  0x32   :  { %601 = vmatprep.subr.bf16.mxu0 %v787_v0  ;;  %v420_v51 = vld [vmem:[#allocation5 + $0x88] sm:$0xff]  ;;  %v422_v52 = vld [vmem:[#allocation5 + $0x98] sm:$0xff]  ;;  %v617_v53 = vpack.c.bf16 %v129_v46, %v128_v45  ;;  %v130_v54 = vld [vmem:[%s1112_s2 + $0x90] sm:$0xff]  ;;  %v654_v56 = vpack.c.bf16 %v417_v50, %v415_v49 }
  0x33   :  { %647 = vmatpush1.bf16.msra.mxu1 %v646_v37  ;;  %v131_v55 = vld [vmem:[%s1112_s2 + $0x98] sm:$0xff]  ;;  %v656_v57 = vpack.c.bf16 %v422_v52, %v420_v51  ;;  %v419_v58 = vld [vmem:[#allocation5 + $0x80] sm:$0xff]  ;;  %v421_v59 = vld [vmem:[#allocation5 + $0x90] sm:$0xff] }
  0x34   :  { %649 = vmatprep.subr.bf16.mxu1 %v648_v39  ;;  %v424_v60 = vld [vmem:[#allocation5 + $0xa8] sm:$0xff]  ;;  %v426_v61 = vld [vmem:[#allocation5 + $0xb8] sm:$0xff]  ;;  %v620_v62 = vpack.c.bf16 %v131_v55, %v130_v54  ;;  %v132_v63 = vld [vmem:[%s1112_s2 + $0xa0] sm:$0xff]  ;;  %v658_v2 = vpack.c.bf16 %v421_v59, %v419_v58 }
  0x35   :  { %603 = vmatpush1.bf16.msra.mxu0 %v602_v13  ;;  %v133_v1 = vld [vmem:[%s1112_s2 + $0xa8] sm:$0xff]  ;;  %v660_v3 = vpack.c.bf16 %v426_v61, %v424_v60  ;;  %v423_v4 = vld [vmem:[#allocation5 + $0xa0] sm:$0xff]  ;;  %v425_v5 = vld [vmem:[#allocation5 + $0xb0] sm:$0xff] }
  0x36   :  { %604 = vmatprep.subr.bf16.mxu0 %v787_v0  ;;  %v428_v6 = vld [vmem:[#allocation5 + $0xc8] sm:$0xff]  ;;  %v430_v7 = vld [vmem:[#allocation5 + $0xd8] sm:$0xff]  ;;  %v623_v8 = vpack.c.bf16 %v133_v1, %v132_v63  ;;  %v134_v9 = vld [vmem:[%s1112_s2 + $0xb0] sm:$0xff]  ;;  %v662_v11 = vpack.c.bf16 %v425_v5, %v423_v4 }
  0x37   :  { %651 = vmatpush1.bf16.msra.mxu1 %v650_v47  ;;  %v135_v10 = vld [vmem:[%s1112_s2 + $0xb8] sm:$0xff]  ;;  %v664_v12 = vpack.c.bf16 %v430_v7, %v428_v6  ;;  %v427_v13 = vld [vmem:[#allocation5 + $0xc0] sm:$0xff]  ;;  %v429_v14 = vld [vmem:[#allocation5 + $0xd0] sm:$0xff] }
  0x38   :  { %653 = vmatprep.subr.bf16.mxu1 %v652_v48  ;;  %v432_v15 = vld [vmem:[#allocation5 + $0xe8] sm:$0xff]  ;;  %v626_v17 = vpack.c.bf16 %v135_v10, %v134_v9  ;;  %v136_v18 = vld [vmem:[%s1112_s2 + $0xc0] sm:$0xff]  ;;  %v666_v20 = vpack.c.bf16 %v429_v14, %v427_v13  ;;  %v433_v24 = vld [vmem:[#allocation5 + $0xf0] sm:$0xff] }
  0x39   :  { %606 = vmatpush1.bf16.msra.mxu0 %v605_v16  ;;  %v434_v16 = vld [vmem:[#allocation5 + $0xf8] sm:$0xff]  ;;  %v431_v23 = vld [vmem:[#allocation5 + $0xe0] sm:$0xff]  ;;  %v436_v25 = vld [vmem:[#allocation5 + $0x108] sm:$0xff] }
  0x3a   :  { %607 = vmatprep.subr.bf16.mxu0 %v787_v0  ;;  %v668_v22 = vpack.c.bf16 %v434_v16, %v432_v15  ;;  %v438_v26 = vld [vmem:[#allocation5 + $0x118] sm:$0xff]  ;;  %v138_v29 = vld [vmem:[%s1112_s2 + $0xd0] sm:$0xff]  ;;  %v435_v34 = vld [vmem:[#allocation5 + $0x100] sm:$0xff] }
  0x3b   :  { %655 = vmatpush1.bf16.msra.mxu1 %v654_v56  ;;  %v139_v30 = vld [vmem:[%s1112_s2 + $0xd8] sm:$0xff]  ;;  %v672_v33 = vpack.c.bf16 %v438_v26, %v436_v25  ;;  %v437_v35 = vld [vmem:[#allocation5 + $0x110] sm:$0xff]  ;;  %v440_v36 = vld [vmem:[#allocation5 + $0x128] sm:$0xff] }
  0x3c   :  { %657 = vmatprep.subr.bf16.mxu1 %v656_v57  ;;  %v442_v37 = vld [vmem:[#allocation5 + $0x138] sm:$0xff]  ;;  %v632_v38 = vpack.c.bf16 %v139_v30, %v138_v29  ;;  %v948_v39 = vld [vmem:[%s1113_s3] sm:$0x3]  ;;  %v141_v41 = vld [vmem:[%s1112_s2 + $0xe8] sm:$0xff]  ;;  %v674_v42 = vpack.c.bf16 %v437_v35, %v435_v34  ;;  %v470_v34 = vsub.s32 0, %v935_v27 }
  0x3d   :  { %609 = vmatpush1.bf16.msra.mxu0 %v608_v19  ;;  %v137_v19 = vld [vmem:[%s1112_s2 + $0xc8] sm:$0xff]  ;;  %v140_v40 = vld [vmem:[%s1112_s2 + $0xe0] sm:$0xff]  ;;  %v475_v43 = vrot.slane %v948_v39, %v474_v32  ;;  %v441_v46 = vld [vmem:[#allocation5 + $0x130] sm:$0xff] }
  0x3e   :  { %610 = vmatprep.subr.bf16.mxu0 %v787_v0  ;;  %v629_v28 = vpack.c.bf16 %v137_v19, %v136_v18  ;;  %v439_v45 = vld [vmem:[#allocation5 + $0x120] sm:$0xff]  ;;  %v444_v47 = vld [vmem:[#allocation5 + $0x148] sm:$0xff]  ;;  %v446_v48 = vld [vmem:[#allocation5 + $0x158] sm:$0xff]  ;;  %v635_v49 = vpack.c.bf16 %v141_v41, %v140_v40 }
  0x3f   :  { %659 = vmatpush1.bf16.msra.mxu1 %v658_v2  ;;  %542 = vmatprep.mubr.f32.mxu1 %v475_v43  ;;  %v142_v50 = vld [vmem:[%s1112_s2 + $0xf0] sm:$0xff]  ;;  %v143_v51 = vld [vmem:[%s1112_s2 + $0xf8] sm:$0xff]  ;;  %v678_v52 = vpack.c.bf16 %v441_v46, %v439_v45  ;;  %v443_v54 = vld [vmem:[#allocation5 + $0x140] sm:$0xff] }
  0x40   :  { %661 = vmatprep.subr.bf16.mxu1 %v660_v3  ;;  %v445_v55 = vld [vmem:[#allocation5 + $0x150] sm:$0xff]  ;;  %v448_v56 = vld [vmem:[#allocation5 + $0x168] sm:$0xff]  ;;  %v450_v57 = vld [vmem:[#allocation5 + $0x178] sm:$0xff]  ;;  %v638_v58 = vpack.c.bf16 %v143_v51, %v142_v50 }
  0x41   :  { %612 = vmatpush1.bf16.msra.mxu0 %v611_v31  ;;  %v670_v31 = vpack.c.bf16 %v433_v24, %v431_v23  ;;  %v682_v59 = vpack.c.bf16 %v445_v55, %v443_v54  ;;  %v684_v60 = vpack.c.bf16 %v450_v57, %v448_v56  ;;  %v447_v61 = vld [vmem:[#allocation5 + $0x160] sm:$0xff]  ;;  %v452_v63 = vld [vmem:[#allocation5 + $0x188] sm:$0xff]  ;;  %v454_v1 = vld [vmem:[#allocation5 + $0x198] sm:$0xff] }
  0x42   :  { %613 = vmatprep.subr.bf16.mxu0 %v787_v0  ;;  %v48_v2 = vld [vmem:[#allocation2] sm:$0xff]  ;;  %v51_v3 = vld [vmem:[#allocation2 + $0x18] sm:$0xff]  ;;  %v688_v5 = vpack.c.bf16 %v454_v1, %v452_v63  ;;  %v453_v7 = vld [vmem:[#allocation5 + $0x190] sm:$0xff] }
  0x43   :  { %663 = vmatpush1.bf16.msra.mxu1 %v662_v11  ;;  %v451_v6 = vld [vmem:[#allocation5 + $0x180] sm:$0xff]  ;;  %v50_v9 = vld [vmem:[#allocation2 + $0x10] sm:$0xff]  ;;  %v53_v10 = vld [vmem:[#allocation2 + $0x28] sm:$0xff] }
  0x44   :  { %665 = vmatprep.subr.bf16.mxu1 %v664_v12  ;;  %v690_v11 = vpack.c.bf16 %v453_v7, %v451_v6  ;;  %v455_v13 = vld [vmem:[#allocation5 + $0x1a0] sm:$0xff]  ;;  %v457_v14 = vld [vmem:[#allocation5 + $0x1b0] sm:$0xff]  ;;  %v460_v15 = vld [vmem:[#allocation5 + $0x1c8] sm:$0xff] }
  0x45   :  { %615 = vmatpush1.bf16.msra.mxu0 %v614_v44  ;;  %v676_v44 = vpack.c.bf16 %v442_v37, %v440_v36  ;;  %v462_v16 = vld [vmem:[#allocation5 + $0x1d8] sm:$0xff]  ;;  %v694_v19 = vpack.c.bf16 %v457_v14, %v455_v13  ;;  %v461_v23 = vld [vmem:[#allocation5 + $0x1d0] sm:$0xff]  ;;  %v464_v24 = vld [vmem:[#allocation5 + $0x1e8] sm:$0xff] }
  0x46   :  { %616 = vmatprep.subr.bf16.mxu0 %v787_v0  ;;  %v55_v18 = vld [vmem:[#allocation2 + $0x38] sm:$0xff]  ;;  %v54_v26 = vld [vmem:[#allocation2 + $0x30] sm:$0xff]  ;;  %v61_v40 = vld [vmem:[#allocation2 + $0x68] sm:$0xff] }
  0x47   :  { %667 = vmatpush1.bf16.msra.mxu1 %v666_v20  ;;  %v696_v20 = vpack.c.bf16 %v462_v16, %v460_v15  ;;  %v466_v25 = vld [vmem:[#allocation5 + $0x1f8] sm:$0xff]  ;;  %v465_v32 = vld [vmem:[#allocation5 + $0x1f0] sm:$0xff]  ;;  %v60_v41 = vld [vmem:[#allocation2 + $0x60] sm:$0xff] }
  0x48   :  { %669 = vmatprep.subr.bf16.mxu1 %v668_v22  ;;  %v459_v22 = vld [vmem:[#allocation5 + $0x1c0] sm:$0xff]  ;;  %v700_v30 = vpack.c.bf16 %v466_v25, %v464_v24  ;;  %v59_v35 = vld [vmem:[#allocation2 + $0x58] sm:$0xff]  ;;  %v58_v37 = vld [vmem:[#allocation2 + $0x50] sm:$0xff] }
  0x49   :  { %618 = vmatpush1.bf16.msra.mxu0 %v617_v53  ;;  %v680_v53 = vpack.c.bf16 %v446_v48, %v444_v47  ;;  %v698_v29 = vpack.c.bf16 %v461_v23, %v459_v22  ;;  %v62_v43 = vld [vmem:[#allocation2 + $0x70] sm:$0xff]  ;;  %v64_v45 = vld [vmem:[#allocation2 + $0x80] sm:$0xff]  ;;  %v67_v46 = vld [vmem:[#allocation2 + $0x98] sm:$0xff] }
  0x4a   :  { %619 = vmatprep.subr.bf16.mxu0 %v787_v0  ;;  %v66_v47 = vld [vmem:[#allocation2 + $0x90] sm:$0xff]  ;;  %v69_v48 = vld [vmem:[#allocation2 + $0xa8] sm:$0xff]  ;;  %v76_v56 = vld [vmem:[#allocation2 + $0xe0] sm:$0xff] }
  0x4b   :  { %671 = vmatpush1.bf16.msra.mxu1 %v670_v31  ;;  %v463_v31 = vld [vmem:[#allocation5 + $0x1e0] sm:$0xff]  ;;  %v70_v50 = vld [vmem:[#allocation2 + $0xb0] sm:$0xff]  ;;  %v73_v51 = vld [vmem:[#allocation2 + $0xc8] sm:$0xff] }
  0x4c   :  { %673 = vmatprep.subr.bf16.mxu1 %v672_v33  ;;  %v56_v33 = vld [vmem:[#allocation2 + $0x40] sm:$0xff]  ;;  %v702_v36 = vpack.c.bf16 %v465_v32, %v463_v31  ;;  %v74_v54 = vld [vmem:[#allocation2 + $0xd0] sm:$0xff]  ;;  %v77_v55 = vld [vmem:[#allocation2 + $0xe8] sm:$0xff] }
  0x4d   :  { %621 = vmatpush1.bf16.msra.mxu0 %v620_v62  ;;  %v449_v62 = vld [vmem:[#allocation5 + $0x170] sm:$0xff]  ;;  %v79_v57 = vld [vmem:[#allocation2 + $0xf8] sm:$0xff]  ;;  %v85_v63 = vld [vmem:[#allocation2 + $0x128] sm:$0xff] }
  0x4e   :  { %622 = vmatprep.subr.bf16.mxu0 %v787_v0  ;;  %v686_v4 = vpack.c.bf16 %v449_v62, %v447_v61  ;;  %v83_v61 = vld [vmem:[#allocation2 + $0x118] sm:$0xff]  ;;  %v82_v62 = vld [vmem:[#allocation2 + $0x110] sm:$0xff]  ;;  %v84_v1 = vld [vmem:[#allocation2 + $0x120] sm:$0xff] }
  0x4f   :  { %675 = vmatpush1.bf16.msra.mxu1 %v674_v42  ;;  %v63_v42 = vld [vmem:[#allocation2 + $0x78] sm:$0xff]  ;;  %v90_v7 = vld [vmem:[#allocation2 + $0x150] sm:$0xff]  ;;  %v101_v15 = vld [vmem:[#allocation2 + $0x1a8] sm:$0xff] }
  0x50   :  { %677 = vmatprep.subr.bf16.mxu1 %v676_v44  ;;  %v65_v44 = vld [vmem:[#allocation2 + $0x88] sm:$0xff]  ;;  %v91_v6 = vld [vmem:[#allocation2 + $0x158] sm:$0xff]  ;;  %v98_v14 = vld [vmem:[#allocation2 + $0x190] sm:$0xff] }
  0x51   :  { %624 = vmatpush1.bf16.msra.mxu0 %v623_v8  ;;  %v456_v8 = vld [vmem:[#allocation5 + $0x1a8] sm:$0xff]  ;;  %v99_v13 = vld [vmem:[#allocation2 + $0x198] sm:$0xff]  ;;  %v100_v16 = vld [vmem:[#allocation2 + $0x1a0] sm:$0xff] }
  0x52   :  { %625 = vmatprep.subr.bf16.mxu0 %v787_v0  ;;  %v107_v22 = vld [vmem:[#allocation2 + $0x1d8] sm:$0xff]  ;;  %v106_v23 = vld [vmem:[#allocation2 + $0x1d0] sm:$0xff]  ;;  %v109_v24 = vld [vmem:[#allocation2 + $0x1e8] sm:$0xff] }
  0x53   :  { %679 = vmatpush1.bf16.msra.mxu1 %v678_v52  ;;  %v72_v52 = vld [vmem:[#allocation2 + $0xc0] sm:$0xff] }
  0x54   :  { %681 = vmatprep.subr.bf16.mxu1 %v680_v53  ;;  %v75_v53 = vld [vmem:[#allocation2 + $0xd8] sm:$0xff]  ;;  %v108_v25 = vld [vmem:[#allocation2 + $0x1e0] sm:$0xff] }
  0x55   :  { %627 = vmatpush1.bf16.msra.mxu0 %v626_v17  ;;  %v52_v17 = vld [vmem:[#allocation2 + $0x20] sm:$0xff] }
  0x56   :  { %628 = vmatprep.subr.bf16.mxu0 %v787_v0 }
  0x57   :  { %683 = vmatpush1.bf16.msra.mxu1 %v682_v59  ;;  %v81_v59 = vld [vmem:[#allocation2 + $0x108] sm:$0xff] }
  0x58   :  { %685 = vmatprep.subr.bf16.mxu1 %v684_v60  ;;  %v80_v60 = vld [vmem:[#allocation2 + $0x100] sm:$0xff] }
  0x59   :  { %630 = vmatpush1.bf16.msra.mxu0 %v629_v28  ;;  %v57_v28 = vld [vmem:[#allocation2 + $0x48] sm:$0xff] }
  0x5a   :  { %631 = vmatprep.subr.bf16.mxu0 %v787_v0 }
  0x5b   :  { %687 = vmatpush1.bf16.msra.mxu1 %v686_v4  ;;  %v89_v4 = vld [vmem:[#allocation2 + $0x148] sm:$0xff] }
  0x5c   :  { %689 = vmatprep.subr.bf16.mxu1 %v688_v5  ;;  %v88_v5 = vld [vmem:[#allocation2 + $0x140] sm:$0xff] }
  0x5d   :  { %633 = vmatpush1.bf16.msra.mxu0 %v632_v38  ;;  %v471_v38 = vrot.slane %v948_v39, %v470_v34  ;;  %v68_v39 = vld [vmem:[#allocation2 + $0xa0] sm:$0xff] }
  0x5e   :  { %634 = vmatprep.subr.bf16.mxu0 %v787_v0 }
  0x5f   :  { %691 = vmatpush1.bf16.msra.mxu1 %v690_v11  ;;  %v97_v11 = vld [vmem:[#allocation2 + $0x188] sm:$0xff] }
  0x61   :  { %636 = vmatpush1.bf16.msra.mxu0 %v635_v49  ;;  %v71_v49 = vld [vmem:[#allocation2 + $0xb8] sm:$0xff] }
  0x62   :  { %637 = vmatprep.subr.bf16.mxu0 %v787_v0  ;;  %v458_v0 = vld [vmem:[#allocation5 + $0x1b8] sm:$0xff] }
  0x63   :  { %v692_v12 = vpack.c.bf16 %v458_v0, %v456_v8  ;;  %v93_v8 = vld [vmem:[#allocation2 + $0x168] sm:$0xff]  ;;  %v92_v0 = vld [vmem:[#allocation2 + $0x160] sm:$0xff] }
  0x65   :  { %639 = vmatpush1.bf16.msra.mxu0 %v638_v58  ;;  %693 = vmatprep.subr.bf16.mxu1 %v692_v12  ;;  %v78_v58 = vld [vmem:[#allocation2 + $0xf0] sm:$0xff]  ;;  %v96_v12 = vld [vmem:[#allocation2 + $0x180] sm:$0xff] }
  0x66   :  { %695 = vmatpush1.bf16.msra.mxu1 %v694_v19  ;;  %v105_v19 = vld [vmem:[#allocation2 + $0x1c8] sm:$0xff] }
  0x67   :  { %697 = vmatprep.subr.bf16.mxu1 %v696_v20  ;;  %v104_v20 = vld [vmem:[#allocation2 + $0x1c0] sm:$0xff] }
  0x68   :  { %209 = vmatmul.mubr.f32.vlgmr.msra.gmra.mrb[0].mxu0 %v48_v2  ;;  %v87_v2 = vld [vmem:[#allocation2 + $0x138] sm:$0xff] }
  0x69   :  { %213 = vmatprep.mubr.f32.mxu0 %v51_v3  ;;  %v86_v3 = vld [vmem:[#allocation2 + $0x130] sm:$0xff] }
  0x6a   :  { %699 = vmatpush1.bf16.msra.mxu1 %v698_v29 }
  0x6b   :  { %701 = vmatprep.subr.bf16.mxu1 %v700_v30 }
  0x6c   :  { %214 = vmatmul.mubr.f32.gmra.mrb[2].mxu0 %v50_v9  ;;  %v95_v9 = vld [vmem:[#allocation2 + $0x178] sm:$0xff] }
  0x6d   :  { %218 = vmatprep.mubr.f32.mxu0 %v53_v10  ;;  %v94_v10 = vld [vmem:[#allocation2 + $0x170] sm:$0xff] }
  0x6e   :  { %703 = vmatpush1.bf16.msra.mxu1 %v702_v36 }
  0x70   :  { %219 = vmatmul.mubr.f32.gmra.mrb[4].mxu0 %v52_v17  ;;  %v103_v17 = vld [vmem:[#allocation2 + $0x1b8] sm:$0xff] }
  0x71   :  { %223 = vmatprep.mubr.f32.mxu0 %v55_v18  ;;  %543 = vmatmul.mubr.f32.vlgmr.msra.gmra.mrb[0].mxu1 %v471_v38  ;;  %v102_v18 = vld [vmem:[#allocation2 + $0x1b0] sm:$0xff] }
  0x74   :  { %224 = vmatmul.mubr.f32.gmra.mrb[6].mxu0 %v54_v26  ;;  %v111_v26 = vld [vmem:[#allocation2 + $0x1f8] sm:$0xff] }
  0x75   :  { %228 = vmatprep.mubr.f32.mxu0 %v57_v28  ;;  %v110_v28 = vld [vmem:[#allocation2 + $0x1f0] sm:$0xff] }
  0x78   :  { %229 = vmatmul.mubr.f32.gmra.mrb[8].mxu0 %v56_v33 }
  0x79   :  { %233 = vmatprep.mubr.f32.mxu0 %v59_v35 }
  0x7c   :  { %234 = vmatmul.mubr.f32.gmra.mrb[10].mxu0 %v58_v37  ;;  %v788_v37 = vmov 1966171168  }
  0x7d   :  { %238 = vmatprep.mubr.f32.mxu0 %v61_v40  ;;  %v553_v38 = vunpack.c.l.s4 %v788_v37 }
  0x80   :  { %239 = vmatmul.mubr.f32.gmra.mrb[12].mxu0 %v60_v41 }
  0x81   :  { %243 = vmatprep.mubr.f32.mxu0 %v63_v42  ;;  %v554_v42 = vunpack.c.0.s8 %v553_v38 }
  0x84   :  { %244 = vmatmul.mubr.f32.gmra.mrb[14].mxu0 %v62_v43 }
  0x85   :  { %248 = vmatprep.mubr.f32.mxu0 %v65_v44 }
  0x88   :  { %249 = vmatmul.mubr.f32.gmra.mrb[16].mxu0 %v64_v45 }
  0x89   :  { %253 = vmatprep.mubr.f32.mxu0 %v67_v46  ;;  %v557_v46 = vsub.s32 %v554_v42, %v935_v27 }
  0x8c   :  { %254 = vmatmul.mubr.f32.gmra.mrb[18].mxu0 %v66_v47 }
  0x8d   :  { %258 = vmatprep.mubr.f32.mxu0 %v69_v48 }
  0x90   :  { %259 = vmatmul.mubr.f32.gmra.mrb[20].mxu0 %v68_v39 }
  0x91   :  { %263 = vmatprep.mubr.f32.mxu0 %v71_v49 }
  0x94   :  { %264 = vmatmul.mubr.f32.gmra.mrb[22].mxu0 %v70_v50 }
  0x95   :  { %268 = vmatprep.mubr.f32.mxu0 %v73_v51 }
  0x98   :  { %269 = vmatmul.mubr.f32.gmra.mrb[24].mxu0 %v72_v52 }
  0x99   :  { %273 = vmatprep.mubr.f32.mxu0 %v75_v53 }
  0x9c   :  { %274 = vmatmul.mubr.f32.gmra.mrb[26].mxu0 %v74_v54 }
  0x9d   :  { %278 = vmatprep.mubr.f32.mxu0 %v77_v55 }
  0xa0   :  { %279 = vmatmul.mubr.f32.gmra.mrb[28].mxu0 %v76_v56 }
  0xa1   :  { %283 = vmatprep.mubr.f32.mxu0 %v79_v57 }
  0xa4   :  { %284 = vmatmul.mubr.f32.gmra.mrb[30].mxu0 %v78_v58 }
  0xa5   :  { %288 = vmatprep.mubr.f32.mxu0 %v81_v59 }
  0xa8   :  { %289 = vmatmul.mubr.f32.gmra.mrb[32].mxu0 %v80_v60 }
  0xa9   :  { %293 = vmatprep.mubr.f32.mxu0 %v83_v61 }
  0xac   :  { %294 = vmatmul.mubr.f32.gmra.mrb[34].mxu0 %v82_v62 }
  0xad   :  { %298 = vmatprep.mubr.f32.mxu0 %v85_v63 }
  0xb0   :  { %299 = vmatmul.mubr.f32.gmra.mrb[36].mxu0 %v84_v1 }
  0xb1   :  { %303 = vmatprep.mubr.f32.mxu0 %v87_v2 }
  0xb4   :  { %304 = vmatmul.mubr.f32.gmra.mrb[38].mxu0 %v86_v3 }
  0xb5   :  { %308 = vmatprep.mubr.f32.mxu0 %v89_v4 }
  0xb8   :  { %309 = vmatmul.mubr.f32.gmra.mrb[40].mxu0 %v88_v5 }
  0xb9   :  { %313 = vmatprep.mubr.f32.mxu0 %v91_v6 }
  0xbc   :  { %314 = vmatmul.mubr.f32.gmra.mrb[42].mxu0 %v90_v7 }
  0xbd   :  { %318 = vmatprep.mubr.f32.mxu0 %v93_v8 }
  0xc0   :  { %319 = vmatmul.mubr.f32.gmra.mrb[44].mxu0 %v92_v0 }
  0xc1   :  { %323 = vmatprep.mubr.f32.mxu0 %v95_v9 }
  0xc4   :  { %324 = vmatmul.mubr.f32.gmra.mrb[46].mxu0 %v94_v10 }
  0xc5   :  { %328 = vmatprep.mubr.f32.mxu0 %v97_v11 }
  0xc8   :  { %329 = vmatmul.mubr.f32.gmra.mrb[48].mxu0 %v96_v12 }
  0xc9   :  { %333 = vmatprep.mubr.f32.mxu0 %v99_v13 }
  0xcc   :  { %334 = vmatmul.mubr.f32.gmra.mrb[50].mxu0 %v98_v14 }
  0xcd   :  { %338 = vmatprep.mubr.f32.mxu0 %v101_v15 }
  0xd0   :  { %339 = vmatmul.mubr.f32.gmra.mrb[52].mxu0 %v100_v16 }
  0xd1   :  { %343 = vmatprep.mubr.f32.mxu0 %v103_v17 }
  0xd4   :  { %344 = vmatmul.mubr.f32.gmra.mrb[54].mxu0 %v102_v18 }
  0xd5   :  { %348 = vmatprep.mubr.f32.mxu0 %v105_v19 }
  0xd8   :  { %349 = vmatmul.mubr.f32.gmra.mrb[56].mxu0 %v104_v20 }
  0xd9   :  { %353 = vmatprep.mubr.f32.mxu0 %v107_v22 }
  0xdc   :  { %354 = vmatmul.mubr.f32.gmra.mrb[58].mxu0 %v106_v23 }
  0xdd   :  { %358 = vmatprep.mubr.f32.mxu0 %v109_v24 }
  0xe0   :  { %359 = vmatmul.mubr.f32.gmra.mrb[60].mxu0 %v108_v25 }
  0xe1   :  { %363 = vmatprep.mubr.f32.mxu0 %v111_v26 }
  0xe4   :  { %364 = vmatmul.mubr.f32.gmra.mrb[62].mxu0 %v110_v28 }
 0x13b   :  { %v210_v29 = vpop.f32.mrb[0].mxu0 }
 0x13c   :  { %370 = vst.msk [vmem:[%s1114_s4] sm:$0xff] %vm369_vm0, %v210_v29  ;;  %v212_v30 = vpop.f32.mrb[1].mxu0 }
 0x13f   :  { %v215_v31 = vpop.f32.mrb[2].mxu0 }
 0x140   :  { %371 = vst.msk [vmem:[%s1114_s4 + $0x8] sm:$0xff] %vm369_vm0, %v215_v31  ;;  %v217_v32 = vpop.f32.mrb[3].mxu0 }
 0x143   :  { %v220_v33 = vpop.f32.mrb[4].mxu0 }
 0x144   :  { %372 = vst.msk [vmem:[%s1114_s4 + $0x10] sm:$0xff] %vm369_vm0, %v220_v33  ;;  %v222_v34 = vpop.f32.mrb[5].mxu0  ;;  %v544_v45 = vpop.f32.mrb[0].mxu1 }
 0x145   :  { %v546_v47 = vpop.f32.mrb[1].mxu1 }
 0x146   :  { %v551_v48 = vcombine.low %v544_v45, %v546_v47 }
 0x147   :  { %v225_v35 = vpop.f32.mrb[6].mxu0 }
 0x148   :  { %373 = vst.msk [vmem:[%s1114_s4 + $0x18] sm:$0xff] %vm369_vm0, %v225_v35  ;;  %v227_v36 = vpop.f32.mrb[7].mxu0  ;;  %v558_v50 = vrot.slane %v551_v48, %v557_v46 }
 0x14a   :  { %v565_v51 = vrot.slane %v558_v50, %v557_v46 }
 0x14b   :  { %v230_v40 = vpop.f32.mrb[8].mxu0 }
 0x14c   :  { %374 = vst.msk [vmem:[%s1114_s4 + $0x20] sm:$0xff] %vm369_vm0, %v230_v40  ;;  %v232_v41 = vpop.f32.mrb[9].mxu0 }
 0x14d   :  { %571 = vst.msk [vmem:[#allocation7] sm:$0x3] %vm569_vm1, %v565_v51 }
 0x14f   :  { %v235_v43 = vpop.f32.mrb[10].mxu0 }
 0x150   :  { %375 = vst.msk [vmem:[%s1114_s4 + $0x28] sm:$0xff] %vm369_vm0, %v235_v43  ;;  %v237_v44 = vpop.f32.mrb[11].mxu0 }
 0x153   :  { %v240_v39 = vpop.f32.mrb[12].mxu0 }
 0x154   :  { %376 = vst.msk [vmem:[%s1114_s4 + $0x30] sm:$0xff] %vm369_vm0, %v240_v39  ;;  %v242_v49 = vpop.f32.mrb[13].mxu0 }
 0x157   :  { %v245_v52 = vpop.f32.mrb[14].mxu0 }
 0x158   :  { %377 = vst.msk [vmem:[%s1114_s4 + $0x38] sm:$0xff] %vm369_vm0, %v245_v52  ;;  %v247_v27 = vpop.f32.mrb[15].mxu0 }
 0x159   :  { %766 = shalt.err (!%p763_p6)
}
 0x15a   :  { %s767_s22 = scalar_lea.hbm %s1115_s5, 32 }
 0x15b   :  { %p768_p7 = scmp.ne.s32.totalorder %s1115_s5, %s767_s22  ;;  %p771_p8 = scmp.lt.u32.totalorder %s767_s22, %s1115_s5 }
 0x15d   :  { %p773_p9 = pnand %p771_p8, %p768_p7 }
 0x15f   :  { %776 = shalt.err (!%p773_p9)
}
 0x160   :  { %583 = dma.vmem_to_hbm [thread:$0]  %s581_s15, 32, %s1115_s5, [#allocation4]   ;;  %v250_v21 = vpop.f32.mrb[16].mxu0 }
 0x161   :  { %378 = vst.msk [vmem:[%s1114_s4 + $0x40] sm:$0xff] %vm369_vm0, %v250_v21  ;;  %v252_v53 = vpop.f32.mrb[17].mxu0 }
 0x162   :  { %v255_v54 = vpop.f32.mrb[18].mxu0 }
 0x163   :  { %379 = vst.msk [vmem:[%s1114_s4 + $0x48] sm:$0xff] %vm369_vm0, %v255_v54  ;;  %v257_v55 = vpop.f32.mrb[19].mxu0 }
 0x164   :  { %v260_v56 = vpop.f32.mrb[20].mxu0 }
 0x165   :  { %380 = vst.msk [vmem:[%s1114_s4 + $0x50] sm:$0xff] %vm369_vm0, %v260_v56  ;;  %v262_v57 = vpop.f32.mrb[21].mxu0 }
 0x167   :  { %v265_v58 = vpop.f32.mrb[22].mxu0 }
 0x168   :  { %381 = vst.msk [vmem:[%s1114_s4 + $0x58] sm:$0xff] %vm369_vm0, %v265_v58  ;;  %v267_v59 = vpop.f32.mrb[23].mxu0 }
 0x16b   :  { %v270_v60 = vpop.f32.mrb[24].mxu0 }
 0x16c   :  { %382 = vst.msk [vmem:[%s1114_s4 + $0x60] sm:$0xff] %vm369_vm0, %v270_v60  ;;  %v272_v61 = vpop.f32.mrb[25].mxu0 }
 0x16f   :  { %v275_v62 = vpop.f32.mrb[26].mxu0 }
 0x170   :  { %383 = vst.msk [vmem:[%s1114_s4 + $0x68] sm:$0xff] %vm369_vm0, %v275_v62  ;;  %v277_v63 = vpop.f32.mrb[27].mxu0 }
 0x173   :  { %v280_v1 = vpop.f32.mrb[28].mxu0 }
 0x174   :  { %384 = vst.msk [vmem:[%s1114_s4 + $0x70] sm:$0xff] %vm369_vm0, %v280_v1  ;;  %v282_v2 = vpop.f32.mrb[29].mxu0 }
 0x177   :  { %v285_v3 = vpop.f32.mrb[30].mxu0 }
 0x178   :  { %385 = vst.msk [vmem:[%s1114_s4 + $0x78] sm:$0xff] %vm369_vm0, %v285_v3  ;;  %v287_v4 = vpop.f32.mrb[31].mxu0 }
 0x17b   :  { %v290_v5 = vpop.f32.mrb[32].mxu0 }
 0x17c   :  { %386 = vst.msk [vmem:[%s1114_s4 + $0x80] sm:$0xff] %vm369_vm0, %v290_v5  ;;  %v292_v6 = vpop.f32.mrb[33].mxu0 }
 0x17f   :  { %v295_v7 = vpop.f32.mrb[34].mxu0 }
 0x180   :  { %387 = vst.msk [vmem:[%s1114_s4 + $0x88] sm:$0xff] %vm369_vm0, %v295_v7  ;;  %v297_v8 = vpop.f32.mrb[35].mxu0 }
 0x183   :  { %v300_v0 = vpop.f32.mrb[36].mxu0 }
 0x184   :  { %388 = vst.msk [vmem:[%s1114_s4 + $0x90] sm:$0xff] %vm369_vm0, %v300_v0  ;;  %v302_v9 = vpop.f32.mrb[37].mxu0 }
 0x187   :  { %v305_v10 = vpop.f32.mrb[38].mxu0 }
 0x188   :  { %389 = vst.msk [vmem:[%s1114_s4 + $0x98] sm:$0xff] %vm369_vm0, %v305_v10  ;;  %v307_v11 = vpop.f32.mrb[39].mxu0 }
 0x18b   :  { %v310_v12 = vpop.f32.mrb[40].mxu0 }
 0x18c   :  { %390 = vst.msk [vmem:[%s1114_s4 + $0xa0] sm:$0xff] %vm369_vm0, %v310_v12  ;;  %v312_v13 = vpop.f32.mrb[41].mxu0 }
 0x18f   :  { %v315_v14 = vpop.f32.mrb[42].mxu0 }
 0x190   :  { %391 = vst.msk [vmem:[%s1114_s4 + $0xa8] sm:$0xff] %vm369_vm0, %v315_v14  ;;  %v317_v15 = vpop.f32.mrb[43].mxu0 }
 0x193   :  { %v320_v16 = vpop.f32.mrb[44].mxu0 }
 0x194   :  { %392 = vst.msk [vmem:[%s1114_s4 + $0xb0] sm:$0xff] %vm369_vm0, %v320_v16  ;;  %v322_v17 = vpop.f32.mrb[45].mxu0 }
 0x197   :  { %v325_v18 = vpop.f32.mrb[46].mxu0 }
 0x198   :  { %393 = vst.msk [vmem:[%s1114_s4 + $0xb8] sm:$0xff] %vm369_vm0, %v325_v18  ;;  %v327_v19 = vpop.f32.mrb[47].mxu0 }
 0x19b   :  { %v330_v20 = vpop.f32.mrb[48].mxu0 }
 0x19c   :  { %394 = vst.msk [vmem:[%s1114_s4 + $0xc0] sm:$0xff] %vm369_vm0, %v330_v20  ;;  %v332_v22 = vpop.f32.mrb[49].mxu0 }
 0x19f   :  { %v335_v23 = vpop.f32.mrb[50].mxu0 }
 0x1a0   :  { %395 = vst.msk [vmem:[%s1114_s4 + $0xc8] sm:$0xff] %vm369_vm0, %v335_v23  ;;  %v337_v24 = vpop.f32.mrb[51].mxu0 }
 0x1a3   :  { %v340_v25 = vpop.f32.mrb[52].mxu0 }
 0x1a4   :  { %396 = vst.msk [vmem:[%s1114_s4 + $0xd0] sm:$0xff] %vm369_vm0, %v340_v25  ;;  %v342_v26 = vpop.f32.mrb[53].mxu0 }
 0x1a7   :  { %v345_v28 = vpop.f32.mrb[54].mxu0 }
 0x1a8   :  { %397 = vst.msk [vmem:[%s1114_s4 + $0xd8] sm:$0xff] %vm369_vm0, %v345_v28  ;;  %v347_v29 = vpop.f32.mrb[55].mxu0 }
 0x1ab   :  { %v350_v30 = vpop.f32.mrb[56].mxu0 }
 0x1ac   :  { %398 = vst.msk [vmem:[%s1114_s4 + $0xe0] sm:$0xff] %vm369_vm0, %v350_v30  ;;  %v352_v31 = vpop.f32.mrb[57].mxu0 }
 0x1af   :  { %v355_v32 = vpop.f32.mrb[58].mxu0 }
 0x1b0   :  { %399 = vst.msk [vmem:[%s1114_s4 + $0xe8] sm:$0xff] %vm369_vm0, %v355_v32  ;;  %v357_v33 = vpop.f32.mrb[59].mxu0 }
 0x1b3   :  { %v360_v34 = vpop.f32.mrb[60].mxu0 }
 0x1b4   :  { %400 = vst.msk [vmem:[%s1114_s4 + $0xf0] sm:$0xff] %vm369_vm0, %v360_v34  ;;  %v362_v35 = vpop.f32.mrb[61].mxu0 }
 0x1b7   :  { %v365_v36 = vpop.f32.mrb[62].mxu0 }
 0x1b8   :  { %401 = vst.msk [vmem:[%s1114_s4 + $0xf8] sm:$0xff] %vm369_vm0, %v365_v36  ;;  %v367_v37 = vpop.f32.mrb[63].mxu0 }
 0x1b9   :  { %781 = dma.done.wait [#allocation4], 32  }
 0x1ba   :  { %782 = vsyncadd [#allocation4], 4294967264 }
 0x1bb   :  { %589 = vsyncpa [#allocation3], 1 }
 0x1bc   :  { %590 = vsyncpa [#allocation6], 1 }
 0x1bd   :  { %591 = vsyncpa [#allocation4], 1 }

</bundles_post_ra>
